<compile_context>
chip_gen: v6e
topology: v6e:2x2x1
jax: 0.10.0
libtpu: 0.0.40
codegen_flags: <defaults>
</compile_context>

<pallas_src>
import jax
import jax.numpy as jnp
from jax.experimental import pallas as pl
from jax.experimental.pallas import tpu as pltpu

LANE = 128


def _round_up(n, m):
    return ((n + m - 1) // m) * m


# ---------------------------------------------------------------------------
# Kernel: one batch tile per grid step, weights resident in VMEM.
# ---------------------------------------------------------------------------
def mlp_fused_kernel(x_ref, w1_ref, b1_ref, w234_ref, b234_ref, o_ref):
    # Cast activations to the weight dtype inside the kernel (free VPU filler
    # in this DMA-bound regime; engages the bf16 MXU path when weights are
    # bf16).  Accumulation, bias add and ReLU stay in f32 (v5e VPU has no bf16).
    x = x_ref[...].astype(w1_ref.dtype)
    h = jnp.dot(x, w1_ref[...], preferred_element_type=jnp.float32)
    h = jnp.maximum(h + b1_ref[...], 0.0)
    y = jnp.dot(h.astype(w234_ref.dtype), w234_ref[...],
                preferred_element_type=jnp.float32) + b234_ref[...]
    o_ref[...] = y.astype(o_ref.dtype)


# ---------------------------------------------------------------------------
# Param preparation: fold layers 2-4, pad only the hidden/output lane dims.
# Done ONCE (outside the per-call critical path).  d_in is NOT padded — the
# activations travel at their natural width.
# ---------------------------------------------------------------------------
def prepare_params(params, compute_dtype=jnp.float32):
    (w1, b1), (w2, b2), (w3, b3), (w4, b4) = params
    d_in, h1 = w1.shape
    d_out = w4.shape[1]

    # Algebraic collapse of the three activation-free layers (exact in real
    # arithmetic; fold is performed in f32).
    w234 = (w2 @ w3) @ w4                       # (H1, D_out)
    b234 = ((b2 @ w3 + b3) @ w4) + b4           # (1, D_out)

    h1_p = _round_up(h1, LANE)
    d_out_p = _round_up(d_out, LANE)

    w1_p = jnp.zeros((d_in, h1_p), jnp.float32).at[:, :h1].set(w1)
    b1_p = jnp.zeros((1, h1_p), jnp.float32).at[:, :h1].set(b1)
    w234_p = jnp.zeros((h1_p, d_out_p), jnp.float32).at[:h1, :d_out].set(w234)
    b234_p = jnp.zeros((1, d_out_p), jnp.float32).at[:, :d_out].set(b234)

    # Weights in compute dtype (bf16 halves HBM/VMEM traffic and runs the MXU
    # at native rate on v6e/v7x); biases stay f32 (added post-accumulation).
    w1_p = w1_p.astype(compute_dtype)
    w234_p = w234_p.astype(compute_dtype)
    return (w1_p, b1_p, w234_p, b234_p, d_out)


# ---------------------------------------------------------------------------
# Forward wrapper: no wrapper-side padding or casting of x; grid over batch
# with a ragged last block; lane-padded output sliced at the end (optional).
# ---------------------------------------------------------------------------
def mlp_3ocultas_forward(x, fused_params, *, tb=None, out_dtype=None,
                         slice_output=True):
    w1, b1, w234, b234, d_out = fused_params
    compute_dtype = w1.dtype
    B, d_in = x.shape
    assert d_in == w1.shape[0], "feature dim mismatch with prepared params"
    h1_p = w1.shape[1]
    d_out_p = w234.shape[1]
    if out_dtype is None:
        out_dtype = compute_dtype

    # Sublane alignment for the batch tile: bf16 packs (16,128), f32 (8,128).
    sub = 16 if (jnp.dtype(compute_dtype).itemsize < 4
                 or jnp.dtype(out_dtype).itemsize < 4) else 8

    if tb is None:
        b_sub = _round_up(B, sub)
        if b_sub <= 2 * 512:
            # Small batch: split into (at most) two sublane-aligned tiles so
            # the grid has 2 steps and both v7x TensorCores get work.
            tb = max(sub, _round_up(pl.cdiv(b_sub, 2), sub))
        else:
            # Large batch: 512-row tiles (~85% of HBM roofline in measured
            # mem-bound tiling data); still tiny vs v7x's 64 MiB VMEM.
            tb = 512
    tb = _round_up(tb, sub)

    grid_b = pl.cdiv(B, tb)        # ragged last block handled by Pallas masks

    # Advisory cost / VMEM accounting.
    x_itm = jnp.dtype(x.dtype).itemsize
    w_itm = jnp.dtype(compute_dtype).itemsize
    o_itm = jnp.dtype(out_dtype).itemsize
    flops = 2 * B * (d_in * h1_p + h1_p * d_out_p)
    bytes_accessed = int(B * d_in * x_itm
                         + (w1.size + w234.size) * w_itm
                         + (b1.size + b234.size) * 4
                         + B * d_out_p * o_itm)
    vmem_needed = (2 * tb * d_in * x_itm            # double-buffered x tiles
                   + 2 * tb * d_out_p * o_itm       # double-buffered out tiles
                   + (d_in * h1_p + h1_p * d_out_p) * w_itm   # resident weights
                   + (h1_p + d_out_p) * 4           # resident biases
                   + tb * (h1_p + d_out_p) * 4)     # f32 intermediates
    vmem_limit = int(min(max(2 * vmem_needed + (4 << 20), 16 << 20), 48 << 20))

    resident = pl.Buffered(1)      # constant-index blocks need no 2nd buffer

    out = pl.pallas_call(
        mlp_fused_kernel,
        out_shape=jax.ShapeDtypeStruct((B, d_out_p), out_dtype),
        grid_spec=pltpu.PrefetchScalarGridSpec(
            num_scalar_prefetch=0,
            grid=(grid_b,),
            in_specs=[
                # activations: one batch tile per grid step, natural d_in width
                pl.BlockSpec((tb, d_in), lambda i: (i, 0)),
                # weights / biases: constant block index -> DMA'd once,
                # VMEM-resident, single-buffered
                pl.BlockSpec((d_in, h1_p), lambda i: (0, 0),
                             pipeline_mode=resident),
                pl.BlockSpec((1, h1_p), lambda i: (0, 0),
                             pipeline_mode=resident),
                pl.BlockSpec((h1_p, d_out_p), lambda i: (0, 0),
                             pipeline_mode=resident),
                pl.BlockSpec((1, d_out_p), lambda i: (0, 0),
                             pipeline_mode=resident),
            ],
            out_specs=pl.BlockSpec((tb, d_out_p), lambda i: (i, 0)),
        ),
        compiler_params=pltpu.CompilerParams(
            dimension_semantics=("parallel",),      # batch grid across v7x TCs
            vmem_limit_bytes=vmem_limit),
        cost_estimate=pl.CostEstimate(
            flops=flops, transcendentals=0, bytes_accessed=bytes_accessed),
    )(x, w1, b1, w234, b234)

    if slice_output:
        out = out[:, :d_out]
    return out


# ---------------------------------------------------------------------------
# Init + pure-JAX reference (full 4-layer, un-fused) for correctness checking.
# ---------------------------------------------------------------------------
def init_params(key, d_in, h1, h2, h3, d_out):
    """Mimics nn.Linear's U(-1/sqrt(fan_in), 1/sqrt(fan_in)); weights stored
    transposed as (fan_in, fan_out), biases as (1, fan_out)."""
    dims = [(d_in, h1), (h1, h2), (h2, h3), (h3, d_out)]
    params = []
    for fan_in, fan_out in dims:
        key, kw, kb = jax.random.split(key, 3)
        bound = 1.0 / jnp.sqrt(jnp.float32(fan_in))
        w_t = jax.random.uniform(kw, (fan_in, fan_out), jnp.float32,
                                 minval=-bound, maxval=bound)
        b = jax.random.uniform(kb, (1, fan_out), jnp.float32,
                               minval=-bound, maxval=bound)
        params.append((w_t, b))
    return params


def reference_forward(x, params):
    (w1, b1), (w2, b2), (w3, b3), (w4, b4) = params
    h = jnp.maximum(x @ w1 + b1, 0.0)
    h = h @ w2 + b2
    h = h @ w3 + b3
    return h @ w4 + b4


if __name__ == "__main__":
    # Small shapes consistent with an MLP over a bag-of-words feature vector.
    B, D_in, H1, H2, H3, D_out = 80, 32, 64, 48, 32, 8

    key = jax.random.PRNGKey(0)
    key, kx = jax.random.split(key)
    x = jax.random.normal(kx, (B, D_in), jnp.float32)
    params = init_params(key, D_in, H1, H2, H3, D_out)
    y_ref = reference_forward(x, params)

    # f32 path, default tiling heuristic (two even 40-row tiles -> grid of 2).
    fused_f32 = prepare_params(params, jnp.float32)
    y32 = jax.block_until_ready(mlp_3ocultas_forward(x, fused_f32))
    assert y32.shape == (B, D_out)
    assert jnp.allclose(y32, y_ref, atol=1e-4, rtol=1e-4), "f32 mismatch vs reference"

    # f32 path with tb=32: exercises a ragged last batch block (80 = 2*32+16).
    y32b = jax.block_until_ready(mlp_3ocultas_forward(x, fused_f32, tb=32))
    assert y32b.shape == (B, D_out)
    assert jnp.allclose(y32b, y_ref, atol=1e-4, rtol=1e-4), "f32/ragged mismatch vs reference"

    # bf16 weights + bf16 output, f32 accumulation; looser tolerance.
    fused_bf16 = prepare_params(params, jnp.bfloat16)
    y16 = jax.block_until_ready(mlp_3ocultas_forward(x, fused_bf16))
    assert y16.shape == (B, D_out)
    assert jnp.allclose(y16.astype(jnp.float32), y_ref,
                        atol=5e-2, rtol=5e-2), "bf16 mismatch vs reference"

    print("KERNEL_OK")
</pallas_src>

<mosaic_0001>
module attributes {stable_mosaic.version = 11 : i64} {
  func.func @mlp_fused_kernel(%arg0: i32, %arg1: memref<40x32xf32, #tpu.memory_space<vmem>>, %arg2: memref<32x128xf32, #tpu.memory_space<vmem>>, %arg3: memref<1x128xf32, #tpu.memory_space<vmem>>, %arg4: memref<128x128xf32, #tpu.memory_space<vmem>>, %arg5: memref<1x128xf32, #tpu.memory_space<vmem>>, %arg6: memref<40x128xf32, #tpu.memory_space<vmem>>) attributes {dimension_semantics = [#tpu.dimension_semantics<parallel>], iteration_bounds = array<i64: 2>, scalar_prefetch = 0 : i64, scratch_operands = 0 : i64, tpu.core_type = #tpu.core_type<tc>, window_params = [{transform_indices = @transform_0, window_bounds = array<i64: 40, 32>}, {pipeline_mode = #tpu.pipeline_mode<synchronous>, transform_indices = @transform_1, window_bounds = array<i64: 32, 128>}, {pipeline_mode = #tpu.pipeline_mode<synchronous>, transform_indices = @transform_2, window_bounds = array<i64: 1, 128>}, {pipeline_mode = #tpu.pipeline_mode<synchronous>, transform_indices = @transform_3, window_bounds = array<i64: 128, 128>}, {pipeline_mode = #tpu.pipeline_mode<synchronous>, transform_indices = @transform_4, window_bounds = array<i64: 1, 128>}, {transform_indices = @transform_5, window_bounds = array<i64: 40, 128>}]} {
    %c0 = arith.constant 0 : index
    %c0_0 = arith.constant 0 : index
    %0 = vector.load %arg1[%c0, %c0_0] : memref<40x32xf32, #tpu.memory_space<vmem>>, vector<40x32xf32>
    %c0_1 = arith.constant 0 : index
    %c0_2 = arith.constant 0 : index
    %1 = vector.load %arg2[%c0_1, %c0_2] : memref<32x128xf32, #tpu.memory_space<vmem>>, vector<32x128xf32>
    %cst = arith.constant dense<0.000000e+00> : vector<40x128xf32>
    %2 = tpu.matmul %0, %1, %cst {dimension_numbers = #tpu.dot_dimension_numbers<[1], [0], [0], [1], [0, 0, 1, 1], [], []>} : vector<40x32xf32>, vector<32x128xf32>, vector<40x128xf32> -> vector<40x128xf32>
    %c0_3 = arith.constant 0 : index
    %c0_4 = arith.constant 0 : index
    %3 = vector.load %arg3[%c0_3, %c0_4] : memref<1x128xf32, #tpu.memory_space<vmem>>, vector<1x128xf32>
    %4 = vector.broadcast %3 : vector<1x128xf32> to vector<40x128xf32>
    %5 = arith.addf %2, %4 : vector<40x128xf32>
    %cst_5 = arith.constant 0.000000e+00 : f32
    %6 = vector.broadcast %cst_5 : f32 to vector<40x128xf32>
    %7 = arith.maximumf %5, %6 : vector<40x128xf32>
    %c0_6 = arith.constant 0 : index
    %c0_7 = arith.constant 0 : index
    %8 = vector.load %arg4[%c0_6, %c0_7] : memref<128x128xf32, #tpu.memory_space<vmem>>, vector<128x128xf32>
    %cst_8 = arith.constant dense<0.000000e+00> : vector<40x128xf32>
    %9 = tpu.matmul %7, %8, %cst_8 {dimension_numbers = #tpu.dot_dimension_numbers<[1], [0], [0], [1], [0, 0, 1, 1], [], []>} : vector<40x128xf32>, vector<128x128xf32>, vector<40x128xf32> -> vector<40x128xf32>
    %c0_9 = arith.constant 0 : index
    %c0_10 = arith.constant 0 : index
    %10 = vector.load %arg5[%c0_9, %c0_10] : memref<1x128xf32, #tpu.memory_space<vmem>>, vector<1x128xf32>
    %11 = vector.broadcast %10 : vector<1x128xf32> to vector<40x128xf32>
    %12 = arith.addf %9, %11 : vector<40x128xf32>
    %c0_11 = arith.constant 0 : index
    %c0_12 = arith.constant 0 : index
    %13 = vector.load %arg6[%c0_11, %c0_12] : memref<40x128xf32, #tpu.memory_space<vmem>>, vector<40x128xf32>
    tpu.vector_store %arg6[%c0_11, %c0_12], %12 {strides = array<i32>} : memref<40x128xf32, #tpu.memory_space<vmem>>, vector<40x128xf32>,
    return
  }
  func.func @transform_0(%arg0: i32) -> (i32, i32) {
    %c0_i32 = arith.constant 0 : i32
    %c0_i32_0 = arith.constant 0 : i32
    return %arg0, %c0_i32 : i32, i32
  }
  func.func @transform_1(%arg0: i32) -> (i32, i32) {
    %c0_i32 = arith.constant 0 : i32
    %c0_i32_0 = arith.constant 0 : i32
    %c0_i32_1 = arith.constant 0 : i32
    return %c0_i32, %c0_i32_0 : i32, i32
  }
  func.func @transform_2(%arg0: i32) -> (i32, i32) {
    %c0_i32 = arith.constant 0 : i32
    %c0_i32_0 = arith.constant 0 : i32
    %c0_i32_1 = arith.constant 0 : i32
    return %c0_i32, %c0_i32_0 : i32, i32
  }
  func.func @transform_3(%arg0: i32) -> (i32, i32) {
    %c0_i32 = arith.constant 0 : i32
    %c0_i32_0 = arith.constant 0 : i32
    %c0_i32_1 = arith.constant 0 : i32
    return %c0_i32, %c0_i32_0 : i32, i32
  }
  func.func @transform_4(%arg0: i32) -> (i32, i32) {
    %c0_i32 = arith.constant 0 : i32
    %c0_i32_0 = arith.constant 0 : i32
    %c0_i32_1 = arith.constant 0 : i32
    return %c0_i32, %c0_i32_0 : i32, i32
  }
  func.func @transform_5(%arg0: i32) -> (i32, i32) {
    %c0_i32 = arith.constant 0 : i32
    %c0_i32_0 = arith.constant 0 : i32
    return %arg0, %c0_i32 : i32, i32
  }
}

</mosaic_0001>

<bundles_post_ra>
// kernel: tpu_custom_call.1
= control target key start
LH: loop header
LB: loop body
LE: loop exit
PB: predicated region body
PF: predicated region fallthrough
CT: control target
= control target key end

     0   :  { %10 = vsyncpa [#allocation3], 0  ;;  %s1116_s0 = inlined_call_operand.vmem [shape: f32[80,32], index: 0, kind: input, shape index: {}]   ;;  %s1117_s1 = inlined_call_operand.vmem [shape: f32[32,128], index: 1, kind: input, shape index: {}]   ;;  %s1118_s2 = inlined_call_operand.vmem [shape: f32[1,128], index: 2, kind: input, shape index: {}]   ;;  %s1119_s3 = inlined_call_operand.hbm [shape: f32[128,128], index: 3, kind: input, shape index: {}]   ;;  %s1120_s4 = inlined_call_operand.vmem [shape: f32[1,128], index: 4, kind: input, shape index: {}]   ;;  %s1121_s5 = inlined_call_operand.hbm [shape: f32[80,128], index: 5, kind: output, shape index: {}]  }
   0x1   :  { %11 = vsyncpa [#allocation4], 0 }
   0x2   :  { %13 = vsyncpa [#allocation4 + $0x1], 0  ;;  %s911_s18 = smov 0   ;;  %s913_s19 = smov 0  }
   0x3   :  { %s915_s20 = smov 0   ;;  %s917_s21 = smov 0  }
   0x4 LB: > { %s932_s22 = sadd.s32 4294967295, %s871_s21   ;;  %s574_s23 = sadd.s32 4294967294, %s871_s21   ;;  %s871_s21 = sphi %s917_s21, %s1129_s21   ;;  %s867_s20 = sphi %s915_s20, %s1128_s20   ;;  %s863_s19 = sphi %s913_s19, %s1127_s19   ;;  %s859_s18 = sphi %s911_s18, %s1126_s18  }
   0x5   : > { %s936_s24 = sadd.s32 1, %s871_s21   ;;  %s136_s25 = sadd.s32 1, %s867_s20 }
   0x6   : > { %s133_s26 = ssub.s32 %s871_s21, %s936_s24  ;;  %p146_p0 = scmp.ne.s32.totalorder %s867_s20, %s863_s19 }
   0x7   : > { %p134_p1 = scmp.eq.s32.totalorder %s133_s26, 0  ;;  %p147_p2 = scmp.eq.s32.totalorder %s932_s22, 1 }
   0x8   : > { %p152_p3 = scmp.ne.s32.totalorder %s863_s19, %s859_s18  ;;  %p153_p4 = scmp.eq.s32.totalorder %s574_s23, 1 }
   0x9   : > { %s947_s27 = scalar_select %p134_p1, %s867_s20, %s136_s25  }
   0xa   : > { %p949_p5 = por %p147_p2, %p146_p0  ;;  %p953_p6 = por %p153_p4, %p152_p3 }
   0xb   : > { %p575_p7 = scmp.ge.s32.totalorder %s871_s21, 1  ;;  %p160_p8 = scmp.lt.s32.totalorder %s871_s21, 3 }
   0xc   : > { %s1123_s29 = scalar_select %p953_p6, 1, 0 }
   0xd   : > { %p739_p9 = scmp.eq.s32.totalorder %s932_s22, 0  ;;  %p960_p10 = pnand %p575_p7, %p160_p8 }
   0xe   : > { %s873_s6 = smov [#allocation2]  }
   0xf   : > { %s178_s7 = sshll.u32 %s873_s6, 4  ;;  %p731_p11 = pneg %p960_p10  ;;  %s179_s7 = int_to_ptr.vmem [resolvable:$true] %s178_s7 }
  0x10   : > { %s792_s8 = scalar_lea.vmem %s179_s7, 2048  ;;  %p800_p3 = scmp.lt.s32.totalorder %s179_s7, %s179_s7 }
  0x11   : > { %p732_p12 = pnand %p739_p9, %p731_p11  ;;  %p793_p0 = scmp.ne.s32.totalorder %s179_s7, %s792_s8 }
  0x12   : > { %p801_p4 = scmp.lt.s32.totalorder %s792_s8, %s792_s8 }
  0x13   : > { %p783_p13 = pneg %p732_p12 }
  0x14   : > { %p802_p6 = por %p801_p4, %p800_p3 }
  0x15   : > { %p795_p1 = pnand %p793_p0, %p783_p13 }
  0x17   : > { %p796_p2 = pneg %p795_p1 }
  0x19   : > { %p803_p7 = pnand %p802_p6, %p796_p2 }
  0x1b   : > { %806 = shalt.err (!%p803_p7)
}
  0x1c   : > { %s874_s9 = smov 128   ;;  %s875_s10 = smov 8  }
  0x1d   : > { %734 = dma.hbm_to_vmem [thread:$0]  (!%p732_p12), %s1119_s3, 2048, %s179_s7, [#allocation3], %s874_s9, %s874_s9, %s875_s10  }
  0x1e   : > { %206 = sbr.rel (%p960_p10) target bundleno = 468 (0x1d4), region = 40 }
  0x23   : > { %850 = dma.done.wait (%p739_p9), [#allocation3], 2048  }
  0x24   : > { %852 = vsyncadd (%p739_p9), [#allocation3], 4294965248  ;;  %s234_s13 = smul.u32 5, %s932_s22  ;;  %v876_v0 = vmov 0.0   ;;  %vm877_vm0 = vmmov 0   ;;  %v249_v1 = vld [vmem:[%s1117_s1 + $0x18] sm:$0xff] }
  0x25   : > { %622 = vmatprep.subr.mxu0 %v876_v0  ;;  %630 = vmatprep.mubr.msk.f32.mxu0 %vm877_vm0, %v876_v0  ;;  %v248_v2 = vld [vmem:[%s1117_s1 + $0x10] sm:$0xff]  ;;  %v247_v3 = vld [vmem:[%s1117_s1 + $0x8] sm:$0xff]  ;;  %v383_v4 = vld [vmem:[#allocation2 + $0x78] sm:$0xff]  ;;  %vm257_vm1 = vcmask 261120   ;;  %s231_s12 = sand.u32 1, %s863_s19   ;;  %s591_s17 = smul.u32 640, %s932_s22 }
  0x26   : > { %p235_p6 = scmp.lt.s32.totalorder %s234_s13, 9  ;;  %692 = vmatprep.subr.mxu1 %v876_v0  ;;  %680 = vmatprep.mubr.msk.f32.mxu1 %vm877_vm0, %v876_v0  ;;  %v246_v5 = vld [vmem:[%s1117_s1] sm:$0xff]  ;;  %v382_v7 = vld [vmem:[#allocation2 + $0x70] sm:$0xff]  ;;  %v381_v9 = vld [vmem:[#allocation2 + $0x68] sm:$0xff]  ;;  %s1076_s6 = scalar_lea.sflag [#allocation4], %s231_s12 }
  0x27   : > { %623 = vmatpush3.msra.mxu0 %v249_v1  ;;  %708 = vmatpush3.msra.mxu1 %v383_v4  ;;  %v380_v10 = vld [vmem:[#allocation2 + $0x60] sm:$0xff]  ;;  %v379_v12 = vld [vmem:[#allocation2 + $0x58] sm:$0xff]  ;;  %v378_v13 = vld [vmem:[#allocation2 + $0x50] sm:$0xff]  ;;  %s1074_s30 = scalar_lea.hbm %s1121_s5, %s591_s17 }
  0x28   : > { %s1131_s13 = smov (!%p235_p6, %s234_s13), 9  ;;  %624 = vmatprep.subr.mxu0 %v876_v0  ;;  %693 = vmatprep.subr.mxu1 %v876_v0  ;;  %v377_v15 = vld [vmem:[#allocation2 + $0x48] sm:$0xff]  ;;  %v376_v16 = vld [vmem:[#allocation2 + $0x40] sm:$0xff]  ;;  %v375_v18 = vld [vmem:[#allocation2 + $0x38] sm:$0xff] }
  0x29   : > { %s580_s14 = sshll.u32 %s1131_s13, 3  ;;  %625 = vmatpush3.msra.mxu0 %v248_v2  ;;  %709 = vmatpush3.msra.mxu1 %v382_v7  ;;  %v374_v19 = vld [vmem:[#allocation2 + $0x30] sm:$0xff]  ;;  %v373_v20 = vld [vmem:[#allocation2 + $0x28] sm:$0xff]  ;;  %v372_v21 = vld [vmem:[#allocation2 + $0x20] sm:$0xff]  ;;  %s724_s13 = smul.u32 40, %s231_s12 }
  0x2a   : > { %s997_s7 = scalar_lea.vmem %s1116_s0, %s580_s14  ;;  %626 = vmatprep.subr.mxu0 %v876_v0  ;;  %694 = vmatprep.subr.mxu1 %v876_v0  ;;  %v371_v22 = vld [vmem:[#allocation2 + $0x18] sm:$0xff]  ;;  %v370_v23 = vld [vmem:[#allocation2 + $0x10] sm:$0xff]  ;;  %v369_v24 = vld [vmem:[#allocation2 + $0x8] sm:$0xff] }
  0x2b   : > { %627 = vmatpush3.msra.mxu0 %v247_v3  ;;  %v241_v6 = vld [vmem:[%s997_s7] sm:$0xff]  ;;  %v242_v8 = vld [vmem:[%s997_s7 + $0x8] sm:$0xff]  ;;  %710 = vmatpush3.msra.mxu1 %v381_v9  ;;  %v243_v11 = vld [vmem:[%s997_s7 + $0x10] sm:$0xff]  ;;  %s233_s16 = scalar_lea.vmem [#allocation5], %s724_s13 }
  0x2c   : > { %628 = vmatprep.subr.mxu0 %v876_v0  ;;  %695 = vmatprep.subr.mxu1 %v876_v0  ;;  %v244_v14 = vld [vmem:[%s997_s7 + $0x18] sm:$0xff]  ;;  %v245_v17 = vld [vmem:[%s997_s7 + $0x20] sm:$0xff]  ;;  %s500_s23 = sshll.u32 %s233_s16, 4  ;;  %s878_s7 = smov [#allocation5]   ;;  %s1069_s23 = int_to_ptr.vmem [resolvable:$true] %s500_s23 }
  0x2d   : > { %629 = vmatpush3.msra.mxu0 %v246_v5  ;;  %711 = vmatpush3.msra.mxu1 %v380_v10  ;;  %v368_v25 = vld [vmem:[#allocation2] sm:$0xff]  ;;  %s807_s22 = scalar_lea.vmem %s1069_s23, 640  ;;  %s811_s8 = sshll.u32 %s878_s7, 4  ;;  %s812_s8 = int_to_ptr.vmem [resolvable:$false] %s811_s8 }
  0x2e   : > { %631 = vmatmul.mubr.msk.f32.vlgmr.msra.gmra.mxu0 %vm257_vm1, %v241_v6  ;;  %645 = vmatprep.subr.mxu0 %v876_v0  ;;  %v581_v26 = vld [vmem:[%s1118_s2] ss:$0 sm:$0xff]  ;;  %p808_p8 = scmp.ne.s32.totalorder %s1069_s23, %s807_s22  ;;  %s813_s9 = scalar_lea.vmem %s812_s8, 1280 }
  0x2f   : > { %633 = vmatprep.mubr.msk.f32.mxu0 %vm877_vm0, %v876_v0  ;;  %646 = vmatpush3.msra.mxu0 %v383_v4  ;;  %v587_v47 = vld [vmem:[%s1120_s4] ss:$0 sm:$0xff]  ;;  %p814_p11 = scmp.lt.s32.totalorder %s1069_s23, %s812_s8  ;;  %p815_p12 = scmp.lt.s32.totalorder %s813_s9, %s807_s22 }
  0x30   : > { %647 = vmatprep.subr.mxu0 %v876_v0  ;;  %696 = vmatprep.subr.mxu1 %v876_v0  ;;  %p809_p9 = pnand %p808_p8, %p949_p5 }
  0x31   : > { %648 = vmatpush3.msra.mxu0 %v382_v7  ;;  %712 = vmatpush3.msra.mxu1 %v379_v12  ;;  %p816_p13 = por %p815_p12, %p814_p11 }
  0x32   : > { %634 = vmatmul.mubr.msk.f32.gmra.mxu0 %vm257_vm1, %v242_v8  ;;  %649 = vmatprep.subr.mxu0 %v876_v0  ;;  %p810_p10 = pneg %p809_p9 }
  0x33   : > { %636 = vmatprep.mubr.msk.f32.mxu0 %vm877_vm0, %v876_v0  ;;  %650 = vmatpush3.msra.mxu0 %v381_v9 }
  0x34   : > { %651 = vmatprep.subr.mxu0 %v876_v0  ;;  %697 = vmatprep.subr.mxu1 %v876_v0  ;;  %p817_p0 = pnand %p816_p13, %p810_p10 }
  0x35   : > { %652 = vmatpush3.msra.mxu0 %v380_v10  ;;  %713 = vmatpush3.msra.mxu1 %v378_v13 }
  0x36   : > { %637 = vmatmul.mubr.msk.f32.gmra.mxu0 %vm257_vm1, %v243_v11  ;;  %653 = vmatprep.subr.mxu0 %v876_v0 }
  0x37   : > { %639 = vmatprep.mubr.msk.f32.mxu0 %vm877_vm0, %v876_v0  ;;  %654 = vmatpush3.msra.mxu0 %v379_v12 }
  0x38   : > { %655 = vmatprep.subr.mxu0 %v876_v0  ;;  %698 = vmatprep.subr.mxu1 %v876_v0 }
  0x39   : > { %656 = vmatpush3.msra.mxu0 %v378_v13  ;;  %714 = vmatpush3.msra.mxu1 %v377_v15 }
  0x3a   : > { %640 = vmatmul.mubr.msk.f32.gmra.mxu0 %vm257_vm1, %v244_v14  ;;  %657 = vmatprep.subr.mxu0 %v876_v0 }
  0x3b   : > { %642 = vmatprep.mubr.msk.f32.mxu0 %vm877_vm0, %v876_v0  ;;  %658 = vmatpush3.msra.mxu0 %v377_v15 }
  0x3c   : > { %659 = vmatprep.subr.mxu0 %v876_v0  ;;  %699 = vmatprep.subr.mxu1 %v876_v0 }
  0x3d   : > { %660 = vmatpush3.msra.mxu0 %v376_v16  ;;  %715 = vmatpush3.msra.mxu1 %v376_v16 }
  0x3e   : > { %643 = vmatmul.mubr.msk.f32.gmra.mxu0 %vm257_vm1, %v245_v17  ;;  %661 = vmatprep.subr.mxu0 %v876_v0 }
  0x3f   : > { %662 = vmatpush3.msra.mxu0 %v375_v18  ;;  %700 = vmatprep.subr.mxu1 %v876_v0 }
  0x40   : > { %663 = vmatprep.subr.mxu0 %v876_v0  ;;  %716 = vmatpush3.msra.mxu1 %v375_v18 }
  0x41   : > { %664 = vmatpush3.msra.mxu0 %v374_v19  ;;  %701 = vmatprep.subr.mxu1 %v876_v0 }
  0x42   : > { %665 = vmatprep.subr.mxu0 %v876_v0  ;;  %717 = vmatpush3.msra.mxu1 %v374_v19 }
  0x43   : > { %666 = vmatpush3.msra.mxu0 %v373_v20  ;;  %702 = vmatprep.subr.mxu1 %v876_v0 }
  0x44   : > { %667 = vmatprep.subr.mxu0 %v876_v0  ;;  %718 = vmatpush3.msra.mxu1 %v373_v20 }
  0x45   : > { %668 = vmatpush3.msra.mxu0 %v372_v21  ;;  %703 = vmatprep.subr.mxu1 %v876_v0 }
  0x46   : > { %669 = vmatprep.subr.mxu0 %v876_v0  ;;  %719 = vmatpush3.msra.mxu1 %v372_v21 }
  0x47   : > { %670 = vmatpush3.msra.mxu0 %v371_v22  ;;  %677 = vmatprep.mubr.msk.f32.mxu0 %vm877_vm0, %v876_v0 }
  0x48   : > { %671 = vmatprep.subr.mxu0 %v876_v0  ;;  %704 = vmatprep.subr.mxu1 %v876_v0 }
  0x49   : > { %720 = vmatpush3.msra.mxu1 %v371_v22  ;;  %672 = vmatpush3.msra.mxu0 %v370_v23 }
  0x4a   : > { %705 = vmatprep.subr.mxu1 %v876_v0  ;;  %673 = vmatprep.subr.mxu0 %v876_v0 }
  0x4b   : > { %721 = vmatpush3.msra.mxu1 %v370_v23  ;;  %674 = vmatpush3.msra.mxu0 %v369_v24 }
  0x4c   : > { %706 = vmatprep.subr.mxu1 %v876_v0  ;;  %675 = vmatprep.subr.mxu0 %v876_v0 }
  0x4d   : > { %722 = vmatpush3.msra.mxu1 %v369_v24  ;;  %676 = vmatpush3.msra.mxu0 %v368_v25 }
  0x4e   : > { %707 = vmatprep.subr.mxu1 %v876_v0 }
  0x4f   : > { %723 = vmatpush3.msra.mxu1 %v368_v25 }
  0xee   : > { %v339_v27 = vpop.f32.mrf.mxu0 }
  0xef   : > { %v340_v28 = vadd.f32 %v581_v26, %v339_v27 }
  0xf0   : > { %v632_v29 = vpop.f32.mrf.mxu0 }
  0xf1   : > { %v363_v30 = vmax.f32 %v340_v28, 0.0 }
  0xf2   : > { %v344_v31 = vpop.f32.mrf.mxu0 }
  0xf3   : > { %v345_v32 = vadd.f32 %v581_v26, %v344_v31  ;;  %678 = vmatmul.mubr.f32.vlgmr.msra.gmra.mxu0 %v363_v30 }
  0xf4   : > { %v635_v33 = vpop.f32.mrf.mxu0 }
  0xf5   : > { %v364_v34 = vmax.f32 %v345_v32, 0.0 }
  0xf6   : > { %v349_v35 = vpop.f32.mrf.mxu0 }
  0xf7   : > { %v350_v36 = vadd.f32 %v581_v26, %v349_v35  ;;  %681 = vmatmul.mubr.f32.vlgmr.msra.gmra.mxu1 %v364_v34 }
  0xf8   : > { %v638_v37 = vpop.f32.mrf.mxu0  ;;  %683 = vmatprep.mubr.msk.f32.mxu1 %vm877_vm0, %v876_v0 }
  0xf9   : > { %v365_v38 = vmax.f32 %v350_v36, 0.0 }
  0xfa   : > { %v354_v39 = vpop.f32.mrf.mxu0 }
  0xfb   : > { %v355_v40 = vadd.f32 %v581_v26, %v354_v39  ;;  %684 = vmatmul.mubr.f32.gmra.mxu1 %v365_v38 }
  0xfc   : > { %v641_v41 = vpop.f32.mrf.mxu0  ;;  %686 = vmatprep.mubr.msk.f32.mxu1 %vm877_vm0, %v876_v0 }
  0xfd   : > { %v366_v42 = vmax.f32 %v355_v40, 0.0 }
  0xfe   : > { %v359_v43 = vpop.f32.mrf.mxu0 }
  0xff   : > { %v360_v44 = vadd.f32 %v581_v26, %v359_v43  ;;  %687 = vmatmul.mubr.f32.gmra.mxu1 %v366_v42 }
 0x100   : > { %v644_v45 = vpop.f32.mrf.mxu0  ;;  %689 = vmatprep.mubr.msk.f32.mxu1 %vm877_vm0, %v876_v0 }
 0x101   : > { %v367_v46 = vmax.f32 %v360_v44, 0.0 }
 0x103   : > { %690 = vmatmul.mubr.f32.gmra.mxu1 %v367_v46 }
 0x1b3   : > { %v457_v48 = vpop.f32.mrf.mxu0 }
 0x1b4   : > { %v458_v49 = vadd.f32 %v587_v47, %v457_v48 }
 0x1b5   : > { %v679_v50 = vpop.f32.mrf.mxu0 }
 0x1b6   : > { %481 = vst [vmem:[%s233_s16] sm:$0xff] %v458_v49 }
 0x1b7   : > { %v462_v51 = vpop.f32.mrf.mxu1 }
 0x1b8   : > { %v463_v52 = vadd.f32 %v587_v47, %v462_v51 }
 0x1b9   : > { %v682_v53 = vpop.f32.mrf.mxu1 }
 0x1ba   : > { %482 = vst [vmem:[%s233_s16 + $0x8] sm:$0xff] %v463_v52 }
 0x1bb   : > { %v467_v54 = vpop.f32.mrf.mxu1 }
 0x1bc   : > { %v468_v55 = vadd.f32 %v587_v47, %v467_v54 }
 0x1bd   : > { %v685_v56 = vpop.f32.mrf.mxu1 }
 0x1be   : > { %483 = vst [vmem:[%s233_s16 + $0x10] sm:$0xff] %v468_v55 }
 0x1bf   : > { %v472_v57 = vpop.f32.mrf.mxu1 }
 0x1c0   : > { %v473_v58 = vadd.f32 %v587_v47, %v472_v57 }
 0x1c1   : > { %v688_v59 = vpop.f32.mrf.mxu1 }
 0x1c2   : > { %484 = vst [vmem:[%s233_s16 + $0x18] sm:$0xff] %v473_v58 }
 0x1c3   : > { %v477_v60 = vpop.f32.mrf.mxu1 }
 0x1c4   : > { %v478_v61 = vadd.f32 %v587_v47, %v477_v60 }
 0x1c5   : > { %v691_v62 = vpop.f32.mrf.mxu1 }
 0x1c6   : > { %485 = vst [vmem:[%s233_s16 + $0x20] sm:$0xff] %v478_v61 }
 0x1c7   : > { %820 = shalt.err (!%p817_p0)
}
 0x1c8   : > { %s821_s10 = scalar_lea.hbm %s1074_s30, 640  ;;  %s825_s13 = scalar_lea.hbm %s1121_s5, 1280 }
 0x1c9   : > { %p822_p1 = scmp.ne.s32.totalorder %s1074_s30, %s821_s10  ;;  %p826_p4 = scmp.lt.s32.totalorder %s1074_s30, %s1121_s5 }
 0x1ca   : > { %p827_p7 = scmp.lt.s32.totalorder %s825_s13, %s821_s10 }
 0x1cb   : > { %p823_p2 = pnand %p822_p1, %p949_p5 }
 0x1cc   : > { %p828_p6 = por %p827_p7, %p826_p4 }
 0x1cd   : > { %p824_p3 = pneg %p823_p2 }
 0x1cf   : > { %p829_p8 = pnand %p828_p6, %p824_p3 }
 0x1d1   : > { %832 = shalt.err (!%p829_p8)
}
 0x1d2   : > { %s879_s16 = smov 128   ;;  %s880_s17 = smov 8  }
 0x1d3   : > { %729 = dma.vmem_to_hbm [thread:$0]  (%p949_p5), %s1069_s23, 640, %s1074_s30, %s1076_s6, %s879_s16, %s879_s16, %s880_s17  }
 0x1d4 PF: > { %p741_p9 = scmp.ge.s32.totalorder %s871_s21, 2  ;;  %s515_s25 = sand.u32 1, %s859_s18  }
 0x1d5   : > { %p1125_p10 = scmp.ne.s32.totalorder %s1123_s29, 0  ;;  %s516_s26 = scalar_lea.sflag [#allocation4], %s515_s25 }
 0x1d7   : > { %p736_p11 = pnand %p741_p9, %p1125_p10 }
 0x1d9   : > { %p737_p12 = pneg %p736_p11 }
 0x1db   : > { %854 = dma.done.wait (%p737_p12), %s516_s26, 640  }
 0x1dc   : > { %856 = vsyncadd (%p737_p12), %s516_s26, 4294966656  ;;  %p16_p13 = scmp.ge.s32.totalorder %s936_s24, 4   ;;  %s1126_s18 = smov %s863_s19 }
 0x1dd   : > { %s1127_s19 = smov %s867_s20  ;;  %s1128_s20 = smov %s947_s27 }
 0x1de   : > { %s1129_s21 = smov %s936_s24  ;;  %18 = sbr.rel (!%p16_p13) target bundleno = 4 (0x4), region = 80 }
 0x1e3   :  { %521 = vsyncpa [#allocation3], 1 }
 0x1e4   :  { %523 = vsyncpa [#allocation3 + $0x1], 1 }
 0x1e5   :  { %524 = vsyncpa [#allocation4], 1 }
 0x1e6   :  { %526 = vsyncpa [#allocation4 + $0x1], 1 }

</bundles_post_ra>
